<compile_context>
chip_gen: v5e
topology: v5e:2x2
jax: 0.10.0
libtpu: 0.0.40
codegen_flags: <defaults>
</compile_context>

<pallas_src>
import jax
import jax.numpy as jnp
from jax import lax
from jax.experimental import pallas as pl
from jax.experimental.pallas import tpu as pltpu

BN_EPS = 1e-5
_UNROLL_LIMIT = 16  # full unroll for short image loops (LLO scheduler visibility)


def _image_loop(body, tn):
    """Run `body(n)` for n in [0, tn): static unroll if short, scf.for otherwise."""
    if tn <= _UNROLL_LIMIT:
        for n in range(tn):
            body(n)
    else:
        def step(n, carry):
            body(n)
            return carry
        lax.fori_loop(0, tn, step, 0)


def _stats_kernel(a1_ref, a2_ref, g1_ref, g2_ref, s1_ref, s2_ref):
    """Pass 1: accumulate per-chunk Gram matrices + channel sums of relu(a1/a2)."""
    i = pl.program_id(1)

    @pl.when(i == 0)
    def _():
        g1_ref[...] = jnp.zeros_like(g1_ref)
        g2_ref[...] = jnp.zeros_like(g2_ref)
        s1_ref[...] = jnp.zeros_like(s1_ref)
        s2_ref[...] = jnp.zeros_like(s2_ref)

    dn = (((1,), (1,)), ((), ()))  # contract the spatial (lane) axis of both operands

    def image(n):
        h1 = jnp.maximum(a1_ref[n], 0.0)                      # (Cin, S)
        h2 = jnp.maximum(a2_ref[n], 0.0)
        g1_ref[...] += lax.dot_general(h1, h1, dn,
                                       preferred_element_type=jnp.float32)
        g2_ref[...] += lax.dot_general(h2, h2, dn,
                                       preferred_element_type=jnp.float32)
        s1_ref[...] += jnp.sum(h1, axis=1, keepdims=True)     # (Cin, 1), XLU reduce
        s2_ref[...] += jnp.sum(h2, axis=1, keepdims=True)

    _image_loop(image, a1_ref.shape[0])


def _apply_kernel(a1_ref, a2_ref, w1s_ref, w2s_ref, shift_ref, o_ref):
    """Pass 2: recompute relu + 1x1 convs with BN folded into weights / shift."""
    w1s = w1s_ref[...]        # (half, Cin)  -- hoisted, loop invariant
    w2s = w2s_ref[...]
    shift = shift_ref[...]    # (out_ch, 1)

    def image(n):
        h1 = jnp.maximum(a1_ref[n], 0.0)                      # (Cin, S)
        h2 = jnp.maximum(a2_ref[n], 0.0)
        y1 = jnp.dot(w1s, h1, preferred_element_type=jnp.float32)   # (half, S)
        y2 = jnp.dot(w2s, h2, preferred_element_type=jnp.float32)
        y = jnp.concatenate([y1, y2], axis=0) + shift         # (out_ch, S)
        o_ref[n] = y.astype(o_ref.dtype)

    _image_loop(image, a1_ref.shape[0])


def shortcut_forward(x_nchw, w1, w2, gamma, beta, stride):
    """x_nchw: (N, Cin, H, W) f32. w1/w2: (Cin, out_ch//2). gamma/beta: (out_ch,)."""
    N, Cin, H, W = x_nchw.shape
    half = w1.shape[1]
    out_ch = 2 * half

    # --- branch 1: avg_pool2d(k=1, stride) == pure strided subsample.
    a1 = x_nchw[:, :, ::stride, ::stride]                     # (N, Cin, Ho, Wo)
    Ho, Wo = a1.shape[2], a1.shape[3]
    S = Ho * Wo
    # --- branch 2: F.pad(h,(-1,1,-1,1)) + subsample == shift-by-(1,1), zero fill.
    sub2 = x_nchw[:, :, 1::stride, 1::stride]
    a2 = jnp.pad(sub2, ((0, 0), (0, 0),
                        (0, Ho - sub2.shape[2]), (0, Wo - sub2.shape[3])))

    # Reshape-only NCHW-flat layout (no transpose, no concat).
    # TODO(synk): the 2-D strided subsample itself cannot be expressed by a
    # BlockSpec index_map, so these slices stay as wrapper ops.
    a1 = a1.reshape(N, Cin, S)
    a2 = a2.reshape(N, Cin, S)

    # --- images per block: target ~2 MiB per input-branch block.
    # TODO(synk): a per-image footprint > ~4 MiB would additionally need an
    # S-tiling grid axis; out of scope for this module's shapes.
    bytes_per_img = Cin * S * 4
    TN = int(max(1, min(N, (2 * 1024 * 1024) // max(1, bytes_per_img))))
    TN = min(TN, 512)                         # bound the in-kernel image loop
    NB = -(-N // TN)                          # ceil(N / TN)
    n_split = 2 if NB >= 2 else 1             # feed both TensorCores on v7x (pass 1)
    NBh = -(-NB // n_split)
    NB_pad = NBh * n_split
    N_pad = NB_pad * TN
    if N_pad != N:
        # Padded images are all-zero: relu(0)=0 -> zero contribution to BN sums.
        a1 = jnp.pad(a1, ((0, N_pad - N), (0, 0), (0, 0)))
        a2 = jnp.pad(a2, ((0, N_pad - N), (0, 0), (0, 0)))

    # --- explicit VMEM budget (v5e default scoped limit is only 16 MiB).
    vmem_need = (4 * TN * Cin * S + 2 * TN * out_ch * S) * 4 + (1 << 20)
    vmem_limit = int(min(48 * 1024 * 1024,
                         max(32 * 1024 * 1024, int(1.5 * vmem_need))))

    a_spec1 = pl.BlockSpec((TN, Cin, S), lambda c, i: (c * NBh + i, 0, 0))
    mat_spec = pl.BlockSpec((None, Cin, Cin), lambda c, i: (c, 0, 0))
    vec_spec = pl.BlockSpec((None, Cin, 1), lambda c, i: (c, 0, 0))

    # -------- pass 1: per-channel batch statistics (Gram accumulation on MXU).
    g1p, g2p, s1p, s2p = pl.pallas_call(
        _stats_kernel,
        out_shape=(jax.ShapeDtypeStruct((n_split, Cin, Cin), jnp.float32),
                   jax.ShapeDtypeStruct((n_split, Cin, Cin), jnp.float32),
                   jax.ShapeDtypeStruct((n_split, Cin, 1), jnp.float32),
                   jax.ShapeDtypeStruct((n_split, Cin, 1), jnp.float32)),
        grid_spec=pltpu.PrefetchScalarGridSpec(
            num_scalar_prefetch=0,
            grid=(n_split, NBh),
            in_specs=[a_spec1, a_spec1],
            out_specs=[mat_spec, mat_spec, vec_spec, vec_spec]),
        compiler_params=pltpu.CompilerParams(
            dimension_semantics=("parallel", "arbitrary"),
            vmem_limit_bytes=vmem_limit),
    )(a1, a2)

    # Combine the per-core partial sums (tiny) in the wrapper.
    g1 = jnp.sum(g1p, axis=0)
    g2 = jnp.sum(g2p, axis=0)
    s1 = jnp.sum(s1p, axis=0)
    s2 = jnp.sum(s2p, axis=0)

    # --- fold training-mode BN (biased variance, eps=1e-5) into scale/shift,
    #     then fold the scale into the 1x1 conv weights.
    w1T = w1.T.astype(jnp.float32)            # (half, Cin)
    w2T = w2.T.astype(jnp.float32)
    sum_y = jnp.concatenate([w1T @ s1, w2T @ s2], axis=0)                  # (out_ch, 1)
    sum_y2 = jnp.concatenate(
        [jnp.sum((w1T @ g1) * w1T, axis=1, keepdims=True),
         jnp.sum((w2T @ g2) * w2T, axis=1, keepdims=True)], axis=0)        # (out_ch, 1)
    cnt = float(N * S)                        # TRUE count: zero padding is BN-neutral
    mean = sum_y / cnt
    # NOTE: E[y^2]-E[y]^2 in f32; guarded so cancellation can never go negative.
    var = jnp.maximum(sum_y2 / cnt - mean * mean, 0.0)
    inv = lax.rsqrt(var + BN_EPS)
    scale = gamma.reshape(out_ch, 1) * inv
    shift = beta.reshape(out_ch, 1) - mean * scale
    w1s = w1T * scale[:half]                  # (half, Cin), scale folded in
    w2s = w2T * scale[half:]

    # -------- pass 2: recompute relu + convs, apply folded BN; output is NCHW-flat.
    a_spec2 = pl.BlockSpec((TN, Cin, S), lambda i: (i, 0, 0))
    y = pl.pallas_call(
        _apply_kernel,
        out_shape=jax.ShapeDtypeStruct((N_pad, out_ch, S), jnp.float32),
        grid_spec=pltpu.PrefetchScalarGridSpec(
            num_scalar_prefetch=0,
            grid=(NB_pad,),
            in_specs=[a_spec2, a_spec2,
                      pl.BlockSpec((half, Cin), lambda i: (0, 0)),
                      pl.BlockSpec((half, Cin), lambda i: (0, 0)),
                      pl.BlockSpec((out_ch, 1), lambda i: (0, 0))],
            out_specs=pl.BlockSpec((TN, out_ch, S), lambda i: (i, 0, 0))),
        compiler_params=pltpu.CompilerParams(
            dimension_semantics=("parallel",),
            vmem_limit_bytes=vmem_limit),
    )(a1, a2, w1s, w2s, shift)

    # Pure reshape back to NCHW (no transpose needed in this layout).
    return y[:N].reshape(N, out_ch, Ho, Wo)


def _reference_forward(x, w1, w2, gamma, beta, stride):
    """Pure-JAX reference mirroring the PyTorch module (for correctness check)."""
    h = jnp.maximum(x, 0.0)
    h1 = h[:, :, ::stride, ::stride]
    y1 = jnp.einsum('nchw,cd->ndhw', h1, w1)
    hs = jnp.pad(h[:, :, 1:, 1:], ((0, 0), (0, 0), (0, 1), (0, 1)))
    h2 = hs[:, :, ::stride, ::stride]
    y2 = jnp.einsum('nchw,cd->ndhw', h2, w2)
    y = jnp.concatenate([y1, y2], axis=1)
    mean = y.mean(axis=(0, 2, 3), keepdims=True)
    var = ((y - mean) ** 2).mean(axis=(0, 2, 3), keepdims=True)
    g = gamma.reshape(1, -1, 1, 1)
    b = beta.reshape(1, -1, 1, 1)
    return (y - mean) * lax.rsqrt(var + BN_EPS) * g + b


if __name__ == "__main__":
    # Module-consistent small shapes: in_ch=4, out_ch=8, stride=2, x: (2,4,16,16)
    N, in_ch, H, W = 2, 4, 16, 16
    out_ch, stride = 8, 2

    key = jax.random.PRNGKey(0)
    kx, k1, k2 = jax.random.split(key, 3)

    x = jax.random.normal(kx, (N, in_ch, H, W), dtype=jnp.float32)
    # PyTorch Conv2d weight (out_ch//2, in_ch, 1, 1) stored here as (in_ch, out_ch//2).
    w1 = 0.1 * jax.random.normal(k1, (in_ch, out_ch // 2), dtype=jnp.float32)
    w2 = 0.1 * jax.random.normal(k2, (in_ch, out_ch // 2), dtype=jnp.float32)
    # BatchNorm2d default affine init: weight=1, bias=0.
    gamma = jnp.ones((out_ch,), dtype=jnp.float32)
    beta = jnp.zeros((out_ch,), dtype=jnp.float32)

    out = shortcut_forward(x, w1, w2, gamma, beta, stride)
    jax.block_until_ready(out)
    assert out.shape == (N, out_ch, H // stride, W // stride)

    ref = _reference_forward(x, w1, w2, gamma, beta, stride)
    assert jnp.allclose(out, ref, atol=1e-3, rtol=1e-3), "mismatch vs JAX reference"

    print("KERNEL_OK")
</pallas_src>

<mosaic_0001>
module attributes {stable_mosaic.version = 11 : i64} {
  func.func @_stats_kernel(%arg0: i32, %arg1: i32, %arg2: memref<2x4x64xf32, #tpu.memory_space<vmem>>, %arg3: memref<2x4x64xf32, #tpu.memory_space<vmem>>, %arg4: memref<1x4x4xf32, #tpu.memory_space<vmem>>, %arg5: memref<1x4x4xf32, #tpu.memory_space<vmem>>, %arg6: memref<1x4x1xf32, #tpu.memory_space<vmem>>, %arg7: memref<1x4x1xf32, #tpu.memory_space<vmem>>) attributes {dimension_semantics = [#tpu.dimension_semantics<parallel>, #tpu.dimension_semantics<arbitrary>], iteration_bounds = array<i64: 1, 1>, scalar_prefetch = 0 : i64, scratch_operands = 0 : i64, tpu.core_type = #tpu.core_type<tc>, window_params = [{transform_indices = @transform_0, window_bounds = array<i64: 2, 4, 64>}, {transform_indices = @transform_1, window_bounds = array<i64: 2, 4, 64>}, {transform_indices = @transform_2, window_bounds = array<i64: 1, 4, 4>}, {transform_indices = @transform_3, window_bounds = array<i64: 1, 4, 4>}, {transform_indices = @transform_4, window_bounds = array<i64: 1, 4, 1>}, {transform_indices = @transform_5, window_bounds = array<i64: 1, 4, 1>}]} {
    %c0_i32 = arith.constant 0 : i32
    %0 = arith.cmpi eq, %arg1, %c0_i32 : i32
    %1 = arith.extui %0 : i1 to i32
    %c0_i32_0 = arith.constant 0 : i32
    %2 = arith.cmpi ne, %1, %c0_i32_0 : i32
    scf.if %2 {
      %cst_70 = arith.constant 0.000000e+00 : f32
      %79 = vector.broadcast %cst_70 : f32 to vector<4x4xf32>
      %c0_71 = arith.constant 0 : index
      %c0_72 = arith.constant 0 : index
      %c0_73 = arith.constant 0 : index
      %80 = vector.load %arg4[%c0_71, %c0_72, %c0_73] : memref<1x4x4xf32, #tpu.memory_space<vmem>>, vector<1x4x4xf32>
      %81 = vector.shape_cast %80 : vector<1x4x4xf32> to vector<4x4xf32>
      %82 = vector.shape_cast %79 : vector<4x4xf32> to vector<1x4x4xf32>
      tpu.vector_store %arg4[%c0_71, %c0_72, %c0_73], %82 {strides = array<i32>} : memref<1x4x4xf32, #tpu.memory_space<vmem>>, vector<1x4x4xf32>,
      %cst_74 = arith.constant 0.000000e+00 : f32
      %83 = vector.broadcast %cst_74 : f32 to vector<4x4xf32>
      %c0_75 = arith.constant 0 : index
      %c0_76 = arith.constant 0 : index
      %c0_77 = arith.constant 0 : index
      %84 = vector.load %arg5[%c0_75, %c0_76, %c0_77] : memref<1x4x4xf32, #tpu.memory_space<vmem>>, vector<1x4x4xf32>
      %85 = vector.shape_cast %84 : vector<1x4x4xf32> to vector<4x4xf32>
      %86 = vector.shape_cast %83 : vector<4x4xf32> to vector<1x4x4xf32>
      tpu.vector_store %arg5[%c0_75, %c0_76, %c0_77], %86 {strides = array<i32>} : memref<1x4x4xf32, #tpu.memory_space<vmem>>, vector<1x4x4xf32>,
      %cst_78 = arith.constant 0.000000e+00 : f32
      %87 = vector.broadcast %cst_78 : f32 to vector<4x1xf32>
      %c0_79 = arith.constant 0 : index
      %c0_80 = arith.constant 0 : index
      %c0_81 = arith.constant 0 : index
      %88 = vector.load %arg6[%c0_79, %c0_80, %c0_81] : memref<1x4x1xf32, #tpu.memory_space<vmem>>, vector<1x4x1xf32>
      %89 = vector.shape_cast %88 : vector<1x4x1xf32> to vector<4x1xf32>
      %90 = vector.shape_cast %87 : vector<4x1xf32> to vector<1x4x1xf32>
      tpu.vector_store %arg6[%c0_79, %c0_80, %c0_81], %90 {strides = array<i32>} : memref<1x4x1xf32, #tpu.memory_space<vmem>>, vector<1x4x1xf32>,
      %cst_82 = arith.constant 0.000000e+00 : f32
      %91 = vector.broadcast %cst_82 : f32 to vector<4x1xf32>
      %c0_83 = arith.constant 0 : index
      %c0_84 = arith.constant 0 : index
      %c0_85 = arith.constant 0 : index
      %92 = vector.load %arg7[%c0_83, %c0_84, %c0_85] : memref<1x4x1xf32, #tpu.memory_space<vmem>>, vector<1x4x1xf32>
      %93 = vector.shape_cast %92 : vector<1x4x1xf32> to vector<4x1xf32>
      %94 = vector.shape_cast %91 : vector<4x1xf32> to vector<1x4x1xf32>
      tpu.vector_store %arg7[%c0_83, %c0_84, %c0_85], %94 {strides = array<i32>} : memref<1x4x1xf32, #tpu.memory_space<vmem>>, vector<1x4x1xf32>,
    } else {
    }
    %c0 = arith.constant 0 : index
    %c0_1 = arith.constant 0 : index
    %c0_2 = arith.constant 0 : index
    %3 = vector.load %arg2[%c0, %c0_1, %c0_2] : memref<2x4x64xf32, #tpu.memory_space<vmem>>, vector<1x4x64xf32>
    %4 = vector.shape_cast %3 : vector<1x4x64xf32> to vector<4x64xf32>
    %cst = arith.constant 0.000000e+00 : f32
    %5 = vector.broadcast %cst : f32 to vector<4x64xf32>
    %6 = arith.maximumf %4, %5 : vector<4x64xf32>
    %c0_3 = arith.constant 0 : index
    %c0_4 = arith.constant 0 : index
    %c0_5 = arith.constant 0 : index
    %7 = vector.load %arg3[%c0_3, %c0_4, %c0_5] : memref<2x4x64xf32, #tpu.memory_space<vmem>>, vector<1x4x64xf32>
    %8 = vector.shape_cast %7 : vector<1x4x64xf32> to vector<4x64xf32>
    %cst_6 = arith.constant 0.000000e+00 : f32
    %9 = vector.broadcast %cst_6 : f32 to vector<4x64xf32>
    %10 = arith.maximumf %8, %9 : vector<4x64xf32>
    %c0_7 = arith.constant 0 : index
    %c0_8 = arith.constant 0 : index
    %c0_9 = arith.constant 0 : index
    %11 = vector.load %arg4[%c0_7, %c0_8, %c0_9] : memref<1x4x4xf32, #tpu.memory_space<vmem>>, vector<1x4x4xf32>
    %12 = vector.shape_cast %11 : vector<1x4x4xf32> to vector<4x4xf32>
    %cst_10 = arith.constant dense<0.000000e+00> : vector<4x4xf32>
    %13 = tpu.matmul %6, %6, %cst_10 {dimension_numbers = #tpu.dot_dimension_numbers<[1], [1], [0], [0], [0, 0, 1, 0], [], []>} : vector<4x64xf32>, vector<4x64xf32>, vector<4x4xf32> -> vector<4x4xf32>
    %14 = arith.addf %12, %13 : vector<4x4xf32>
    %c0_11 = arith.constant 0 : index
    %c0_12 = arith.constant 0 : index
    %c0_13 = arith.constant 0 : index
    %15 = vector.load %arg4[%c0_11, %c0_12, %c0_13] : memref<1x4x4xf32, #tpu.memory_space<vmem>>, vector<1x4x4xf32>
    %16 = vector.shape_cast %15 : vector<1x4x4xf32> to vector<4x4xf32>
    %17 = vector.shape_cast %14 : vector<4x4xf32> to vector<1x4x4xf32>
    tpu.vector_store %arg4[%c0_11, %c0_12, %c0_13], %17 {strides = array<i32>} : memref<1x4x4xf32, #tpu.memory_space<vmem>>, vector<1x4x4xf32>,
    %c0_14 = arith.constant 0 : index
    %c0_15 = arith.constant 0 : index
    %c0_16 = arith.constant 0 : index
    %18 = vector.load %arg5[%c0_14, %c0_15, %c0_16] : memref<1x4x4xf32, #tpu.memory_space<vmem>>, vector<1x4x4xf32>
    %19 = vector.shape_cast %18 : vector<1x4x4xf32> to vector<4x4xf32>
    %cst_17 = arith.constant dense<0.000000e+00> : vector<4x4xf32>
    %20 = tpu.matmul %10, %10, %cst_17 {dimension_numbers = #tpu.dot_dimension_numbers<[1], [1], [0], [0], [0, 0, 1, 0], [], []>} : vector<4x64xf32>, vector<4x64xf32>, vector<4x4xf32> -> vector<4x4xf32>
    %21 = arith.addf %19, %20 : vector<4x4xf32>
    %c0_18 = arith.constant 0 : index
    %c0_19 = arith.constant 0 : index
    %c0_20 = arith.constant 0 : index
    %22 = vector.load %arg5[%c0_18, %c0_19, %c0_20] : memref<1x4x4xf32, #tpu.memory_space<vmem>>, vector<1x4x4xf32>
    %23 = vector.shape_cast %22 : vector<1x4x4xf32> to vector<4x4xf32>
    %24 = vector.shape_cast %21 : vector<4x4xf32> to vector<1x4x4xf32>
    tpu.vector_store %arg5[%c0_18, %c0_19, %c0_20], %24 {strides = array<i32>} : memref<1x4x4xf32, #tpu.memory_space<vmem>>, vector<1x4x4xf32>,
    %c0_21 = arith.constant 0 : index
    %c0_22 = arith.constant 0 : index
    %c0_23 = arith.constant 0 : index
    %25 = vector.load %arg6[%c0_21, %c0_22, %c0_23] : memref<1x4x1xf32, #tpu.memory_space<vmem>>, vector<1x4x1xf32>
    %26 = vector.shape_cast %25 : vector<1x4x1xf32> to vector<4x1xf32>
    %cst_24 = arith.constant dense<0.000000e+00> : vector<4xf32>
    %27 = vector.multi_reduction <add>, %6, %cst_24 [1] : vector<4x64xf32> to vector<4xf32>
    %28 = vector.shape_cast %27 : vector<4xf32> to vector<4x1xf32>
    %29 = arith.addf %26, %28 : vector<4x1xf32>
    %c0_25 = arith.constant 0 : index
    %c0_26 = arith.constant 0 : index
    %c0_27 = arith.constant 0 : index
    %30 = vector.load %arg6[%c0_25, %c0_26, %c0_27] : memref<1x4x1xf32, #tpu.memory_space<vmem>>, vector<1x4x1xf32>
    %31 = vector.shape_cast %30 : vector<1x4x1xf32> to vector<4x1xf32>
    %32 = vector.shape_cast %29 : vector<4x1xf32> to vector<1x4x1xf32>
    tpu.vector_store %arg6[%c0_25, %c0_26, %c0_27], %32 {strides = array<i32>} : memref<1x4x1xf32, #tpu.memory_space<vmem>>, vector<1x4x1xf32>,
    %c0_28 = arith.constant 0 : index
    %c0_29 = arith.constant 0 : index
    %c0_30 = arith.constant 0 : index
    %33 = vector.load %arg7[%c0_28, %c0_29, %c0_30] : memref<1x4x1xf32, #tpu.memory_space<vmem>>, vector<1x4x1xf32>
    %34 = vector.shape_cast %33 : vector<1x4x1xf32> to vector<4x1xf32>
    %cst_31 = arith.constant dense<0.000000e+00> : vector<4xf32>
    %35 = vector.multi_reduction <add>, %10, %cst_31 [1] : vector<4x64xf32> to vector<4xf32>
    %36 = vector.shape_cast %35 : vector<4xf32> to vector<4x1xf32>
    %37 = arith.addf %34, %36 : vector<4x1xf32>
    %c0_32 = arith.constant 0 : index
    %c0_33 = arith.constant 0 : index
    %c0_34 = arith.constant 0 : index
    %38 = vector.load %arg7[%c0_32, %c0_33, %c0_34] : memref<1x4x1xf32, #tpu.memory_space<vmem>>, vector<1x4x1xf32>
    %39 = vector.shape_cast %38 : vector<1x4x1xf32> to vector<4x1xf32>
    %40 = vector.shape_cast %37 : vector<4x1xf32> to vector<1x4x1xf32>
    tpu.vector_store %arg7[%c0_32, %c0_33, %c0_34], %40 {strides = array<i32>} : memref<1x4x1xf32, #tpu.memory_space<vmem>>, vector<1x4x1xf32>,
    %c1 = arith.constant 1 : index
    %c0_35 = arith.constant 0 : index
    %c0_36 = arith.constant 0 : index
    %41 = vector.load %arg2[%c1, %c0_35, %c0_36] : memref<2x4x64xf32, #tpu.memory_space<vmem>>, vector<1x4x64xf32>
    %42 = vector.shape_cast %41 : vector<1x4x64xf32> to vector<4x64xf32>
    %cst_37 = arith.constant 0.000000e+00 : f32
    %43 = vector.broadcast %cst_37 : f32 to vector<4x64xf32>
    %44 = arith.maximumf %42, %43 : vector<4x64xf32>
    %c1_38 = arith.constant 1 : index
    %c0_39 = arith.constant 0 : index
    %c0_40 = arith.constant 0 : index
    %45 = vector.load %arg3[%c1_38, %c0_39, %c0_40] : memref<2x4x64xf32, #tpu.memory_space<vmem>>, vector<1x4x64xf32>
    %46 = vector.shape_cast %45 : vector<1x4x64xf32> to vector<4x64xf32>
    %cst_41 = arith.constant 0.000000e+00 : f32
    %47 = vector.broadcast %cst_41 : f32 to vector<4x64xf32>
    %48 = arith.maximumf %46, %47 : vector<4x64xf32>
    %c0_42 = arith.constant 0 : index
    %c0_43 = arith.constant 0 : index
    %c0_44 = arith.constant 0 : index
    %49 = vector.load %arg4[%c0_42, %c0_43, %c0_44] : memref<1x4x4xf32, #tpu.memory_space<vmem>>, vector<1x4x4xf32>
    %50 = vector.shape_cast %49 : vector<1x4x4xf32> to vector<4x4xf32>
    %cst_45 = arith.constant dense<0.000000e+00> : vector<4x4xf32>
    %51 = tpu.matmul %44, %44, %cst_45 {dimension_numbers = #tpu.dot_dimension_numbers<[1], [1], [0], [0], [0, 0, 1, 0], [], []>} : vector<4x64xf32>, vector<4x64xf32>, vector<4x4xf32> -> vector<4x4xf32>
    %52 = arith.addf %50, %51 : vector<4x4xf32>
    %c0_46 = arith.constant 0 : index
    %c0_47 = arith.constant 0 : index
    %c0_48 = arith.constant 0 : index
    %53 = vector.load %arg4[%c0_46, %c0_47, %c0_48] : memref<1x4x4xf32, #tpu.memory_space<vmem>>, vector<1x4x4xf32>
    %54 = vector.shape_cast %53 : vector<1x4x4xf32> to vector<4x4xf32>
    %55 = vector.shape_cast %52 : vector<4x4xf32> to vector<1x4x4xf32>
    tpu.vector_store %arg4[%c0_46, %c0_47, %c0_48], %55 {strides = array<i32>} : memref<1x4x4xf32, #tpu.memory_space<vmem>>, vector<1x4x4xf32>,
    %c0_49 = arith.constant 0 : index
    %c0_50 = arith.constant 0 : index
    %c0_51 = arith.constant 0 : index
    %56 = vector.load %arg5[%c0_49, %c0_50, %c0_51] : memref<1x4x4xf32, #tpu.memory_space<vmem>>, vector<1x4x4xf32>
    %57 = vector.shape_cast %56 : vector<1x4x4xf32> to vector<4x4xf32>
    %cst_52 = arith.constant dense<0.000000e+00> : vector<4x4xf32>
    %58 = tpu.matmul %48, %48, %cst_52 {dimension_numbers = #tpu.dot_dimension_numbers<[1], [1], [0], [0], [0, 0, 1, 0], [], []>} : vector<4x64xf32>, vector<4x64xf32>, vector<4x4xf32> -> vector<4x4xf32>
    %59 = arith.addf %57, %58 : vector<4x4xf32>
    %c0_53 = arith.constant 0 : index
    %c0_54 = arith.constant 0 : index
    %c0_55 = arith.constant 0 : index
    %60 = vector.load %arg5[%c0_53, %c0_54, %c0_55] : memref<1x4x4xf32, #tpu.memory_space<vmem>>, vector<1x4x4xf32>
    %61 = vector.shape_cast %60 : vector<1x4x4xf32> to vector<4x4xf32>
    %62 = vector.shape_cast %59 : vector<4x4xf32> to vector<1x4x4xf32>
    tpu.vector_store %arg5[%c0_53, %c0_54, %c0_55], %62 {strides = array<i32>} : memref<1x4x4xf32, #tpu.memory_space<vmem>>, vector<1x4x4xf32>,
    %c0_56 = arith.constant 0 : index
    %c0_57 = arith.constant 0 : index
    %c0_58 = arith.constant 0 : index
    %63 = vector.load %arg6[%c0_56, %c0_57, %c0_58] : memref<1x4x1xf32, #tpu.memory_space<vmem>>, vector<1x4x1xf32>
    %64 = vector.shape_cast %63 : vector<1x4x1xf32> to vector<4x1xf32>
    %cst_59 = arith.constant dense<0.000000e+00> : vector<4xf32>
    %65 = vector.multi_reduction <add>, %44, %cst_59 [1] : vector<4x64xf32> to vector<4xf32>
    %66 = vector.shape_cast %65 : vector<4xf32> to vector<4x1xf32>
    %67 = arith.addf %64, %66 : vector<4x1xf32>
    %c0_60 = arith.constant 0 : index
    %c0_61 = arith.constant 0 : index
    %c0_62 = arith.constant 0 : index
    %68 = vector.load %arg6[%c0_60, %c0_61, %c0_62] : memref<1x4x1xf32, #tpu.memory_space<vmem>>, vector<1x4x1xf32>
    %69 = vector.shape_cast %68 : vector<1x4x1xf32> to vector<4x1xf32>
    %70 = vector.shape_cast %67 : vector<4x1xf32> to vector<1x4x1xf32>
    tpu.vector_store %arg6[%c0_60, %c0_61, %c0_62], %70 {strides = array<i32>} : memref<1x4x1xf32, #tpu.memory_space<vmem>>, vector<1x4x1xf32>,
    %c0_63 = arith.constant 0 : index
    %c0_64 = arith.constant 0 : index
    %c0_65 = arith.constant 0 : index
    %71 = vector.load %arg7[%c0_63, %c0_64, %c0_65] : memref<1x4x1xf32, #tpu.memory_space<vmem>>, vector<1x4x1xf32>
    %72 = vector.shape_cast %71 : vector<1x4x1xf32> to vector<4x1xf32>
    %cst_66 = arith.constant dense<0.000000e+00> : vector<4xf32>
    %73 = vector.multi_reduction <add>, %48, %cst_66 [1] : vector<4x64xf32> to vector<4xf32>
    %74 = vector.shape_cast %73 : vector<4xf32> to vector<4x1xf32>
    %75 = arith.addf %72, %74 : vector<4x1xf32>
    %c0_67 = arith.constant 0 : index
    %c0_68 = arith.constant 0 : index
    %c0_69 = arith.constant 0 : index
    %76 = vector.load %arg7[%c0_67, %c0_68, %c0_69] : memref<1x4x1xf32, #tpu.memory_space<vmem>>, vector<1x4x1xf32>
    %77 = vector.shape_cast %76 : vector<1x4x1xf32> to vector<4x1xf32>
    %78 = vector.shape_cast %75 : vector<4x1xf32> to vector<1x4x1xf32>
    tpu.vector_store %arg7[%c0_67, %c0_68, %c0_69], %78 {strides = array<i32>} : memref<1x4x1xf32, #tpu.memory_space<vmem>>, vector<1x4x1xf32>,
    return
  }
  func.func @transform_0(%arg0: i32, %arg1: i32) -> (i32, i32, i32) {
    %c1_i32 = arith.constant 1 : i32
    %0 = arith.muli %arg0, %c1_i32 : i32
    %1 = arith.addi %0, %arg1 : i32
    %c0_i32 = arith.constant 0 : i32
    %c0_i32_0 = arith.constant 0 : i32
    %c0_i32_1 = arith.constant 0 : i32
    return %1, %c0_i32, %c0_i32_0 : i32, i32, i32
  }
  func.func @transform_1(%arg0: i32, %arg1: i32) -> (i32, i32, i32) {
    %c1_i32 = arith.constant 1 : i32
    %0 = arith.muli %arg0, %c1_i32 : i32
    %1 = arith.addi %0, %arg1 : i32
    %c0_i32 = arith.constant 0 : i32
    %c0_i32_0 = arith.constant 0 : i32
    %c0_i32_1 = arith.constant 0 : i32
    return %1, %c0_i32, %c0_i32_0 : i32, i32, i32
  }
  func.func @transform_2(%arg0: i32, %arg1: i32) -> (i32, i32, i32) {
    %c0_i32 = arith.constant 0 : i32
    %c0_i32_0 = arith.constant 0 : i32
    %c0_i32_1 = arith.constant 0 : i32
    return %arg0, %c0_i32, %c0_i32_0 : i32, i32, i32
  }
  func.func @transform_3(%arg0: i32, %arg1: i32) -> (i32, i32, i32) {
    %c0_i32 = arith.constant 0 : i32
    %c0_i32_0 = arith.constant 0 : i32
    %c0_i32_1 = arith.constant 0 : i32
    return %arg0, %c0_i32, %c0_i32_0 : i32, i32, i32
  }
  func.func @transform_4(%arg0: i32, %arg1: i32) -> (i32, i32, i32) {
    %c0_i32 = arith.constant 0 : i32
    %c0_i32_0 = arith.constant 0 : i32
    %c0_i32_1 = arith.constant 0 : i32
    return %arg0, %c0_i32, %c0_i32_0 : i32, i32, i32
  }
  func.func @transform_5(%arg0: i32, %arg1: i32) -> (i32, i32, i32) {
    %c0_i32 = arith.constant 0 : i32
    %c0_i32_0 = arith.constant 0 : i32
    %c0_i32_1 = arith.constant 0 : i32
    return %arg0, %c0_i32, %c0_i32_0 : i32, i32, i32
  }
}

</mosaic_0001>

<bundles_post_ra>
// kernel: tpu_custom_call.1
= control target key start
LH: loop header
LB: loop body
LE: loop exit
PB: predicated region body
PF: predicated region fallthrough
CT: control target
= control target key end

     0   :  { %11 = vsyncpa [#allocation3], 0  ;;  %s477_s0 = inlined_call_operand.hbm [shape: f32[2,4,64], index: 0, kind: input, shape index: {}]   ;;  %s478_s1 = inlined_call_operand.hbm [shape: f32[2,4,64], index: 1, kind: input, shape index: {}]   ;;  %s479_s2 = inlined_call_operand.hbm [shape: f32[1,4,4], index: 2, kind: output, shape index: {0}]   ;;  %s480_s3 = inlined_call_operand.hbm [shape: f32[1,4,4], index: 3, kind: output, shape index: {1}]   ;;  %s481_s4 = inlined_call_operand.vmem [shape: f32[1,4,1], index: 4, kind: output, shape index: {2}]   ;;  %s482_s5 = inlined_call_operand.vmem [shape: f32[1,4,1], index: 5, kind: output, shape index: {3}]  }
   0x1   :  { %12 = vsyncpa [#allocation6], 0 }
   0x2   :  { %13 = vsyncpa [#allocation4], 0 }
   0x3   :  { %14 = vsyncpa [#allocation9], 0  ;;  %s23_s20 = sshll.u32 %s477_s0, 4  ;;  %s374_s21 = smov [#allocation2]   ;;  %s24_s20 = int_to_ptr.hbm [resolvable:$true] %s23_s20 }
   0x4   :  { %s25_s22 = sshll.u32 %s374_s21, 4  ;;  %s40_s25 = sshll.u32 %s478_s1, 4  ;;  %s26_s22 = int_to_ptr.vmem [resolvable:$true] %s25_s22  ;;  %s41_s25 = int_to_ptr.hbm [resolvable:$true] %s40_s25 }
   0x5   :  { %s375_s26 = smov 64   ;;  %s376_s27 = smov 4  }
   0x6   :  { %31 = dma.hbm_to_vmem [thread:$0]  %s24_s20, 128, %s26_s22, [#allocation3], %s375_s26, %s375_s26, %s376_s27  }
   0x7   :  { %s377_s28 = smov [#allocation5]  }
   0x8   :  { %s42_s29 = sshll.u32 %s377_s28, 4  ;;  %s43_s29 = int_to_ptr.vmem [resolvable:$true] %s42_s29 }
   0x9   :  { %48 = dma.hbm_to_vmem [thread:$0]  %s41_s25, 128, %s43_s29, [#allocation6], %s375_s26, %s375_s26, %s376_s27  }
   0xa   :  { %366 = dma.done.wait [#allocation3], 128  }
   0xb   :  { %367 = vsyncadd [#allocation3], 4294967168 }
   0xc   :  { %368 = dma.done.wait [#allocation6], 128  }
   0xd   :  { %369 = vsyncadd [#allocation6], 4294967168  ;;  %vm68_vm0 = vcmask 3072   ;;  %v378_v0 = vmov 0.0   ;;  %vm76_vm1 = vcmask 523264   ;;  %vm130_vm2 = vcmask 519168  }
   0xe   :  { %69 = vst.msk [vmem:[%s481_s4] sm:$0xf] %vm68_vm0, %v378_v0  ;;  %v71_v1 = vld [vmem:[#allocation2] sm:$0xf]  ;;  %v73_v2 = vld [vmem:[#allocation5] sm:$0xf] }
   0xf   :  { %70 = vst.msk [vmem:[%s482_s5] sm:$0xf] %vm68_vm0, %v378_v0  ;;  %v144_v3 = vld [vmem:[#allocation2 + $0x4] sm:$0xf]  ;;  %v72_v4 = vmax.f32 %v71_v1, 0.0  ;;  %v74_v5 = vmax.f32 %v73_v2, 0.0 }
  0x10   :  { %v145_v6 = vmax.f32 %v144_v3, 0.0  ;;  %v147_v7 = vld [vmem:[#allocation5 + $0x4] sm:$0xf]  ;;  %vm65_vm3 = vcmask 27648   ;;  %s379_s21 = smov [#allocation7]   ;;  %s220_s25 = sshll.u32 %s479_s2, 4  ;;  %s221_s25 = int_to_ptr.hbm [resolvable:$true] %s220_s25 }
  0x11   :  { %v148_v8 = vmax.f32 %v147_v7, 0.0  ;;  %255 = vmatpush.xpose.msk.msra.mxu0 %vm76_vm1, %v72_v4  ;;  %257 = vmatpush.xpose.msk.msra.mxu1 %vm76_vm1, %v74_v5  ;;  %v131_v9 = vsel %vm130_vm2, %v72_v4, 0.0  ;;  %v138_v11 = vsel %vm130_vm2, %v74_v5, 0.0  ;;  %66 = vst.msk [vmem:[#allocation7] sm:$0xf] %vm65_vm3, %v378_v0  ;;  %s218_s22 = sshll.u32 %s379_s21, 4  ;;  %s219_s22 = int_to_ptr.vmem [resolvable:$true] %s218_s22 }
  0x12   :  { %v202_v10 = vsel %vm130_vm2, %v145_v6, 0.0  ;;  %259 = vmatpush.xpose.msk.msra.mxu2 %vm76_vm1, %v145_v6  ;;  %132 = vadd.xlane.f32.xlu0 %v131_v9  ;;  %67 = vst.msk [vmem:[#allocation8] sm:$0xf] %vm65_vm3, %v378_v0  ;;  %s380_s26 = smov [#allocation8]   ;;  %s231_s29 = sshll.u32 %s480_s3, 4  ;;  %s232_s29 = int_to_ptr.hbm [resolvable:$true] %s231_s29 }
  0x13   :  { %261 = vmatpush.xpose.msk.msra.mxu3 %vm76_vm1, %v148_v8  ;;  %203 = vadd.xlane.f32.xlu1 %v202_v10  ;;  %v208_v12 = vsel %vm130_vm2, %v148_v8, 0.0 }
  0x14   :  { %256 = vmatmul.msk.f32.vlgmr.msra.gmra.mxu0 %vm76_vm1, %v72_v4  ;;  %258 = vmatmul.msk.f32.vlgmr.msra.gmra.mxu1 %vm76_vm1, %v74_v5 }
  0x15   :  { %260 = vmatmul.msk.f32.vlgmr.msra.gmra.mxu2 %vm76_vm1, %v145_v6  ;;  %v129_v13 = vld [vmem:[%s481_s4] sm:$0xf] }
  0x16   :  { %262 = vmatmul.msk.f32.vlgmr.msra.gmra.mxu3 %vm76_vm1, %v148_v8  ;;  %v137_v16 = vld [vmem:[%s482_s5] sm:$0xf] }
  0x18   :  { %v75_v19 = vld [vmem:[#allocation7] sm:$0xf] }
  0x19   :  { %v103_v20 = vld [vmem:[#allocation8] sm:$0xf] }
  0x1a   :  { %139 = vadd.xlane.f32.xlu0 %v138_v11 }
  0x1b   :  { %209 = vadd.xlane.f32.xlu1 %v208_v12 }
  0x85   :  { %v133_v14 = vpop.xlane.xlu0 %132 }
  0x86   :  { %v134_v15 = vadd.f32 %v133_v14, %v129_v13  ;;  %v204_v17 = vpop.xlane.xlu1 %203 }
  0x88   :  { %136 = vst.msk [vmem:[%s481_s4] sm:$0xf] %vm68_vm0, %v134_v15 }
  0x8d   :  { %v140_v18 = vpop.xlane.xlu0 %139 }
  0x8e   :  { %v141_v21 = vadd.f32 %v140_v18, %v137_v16  ;;  %v210_v28 = vpop.xlane.xlu1 %209 }
  0x8f   :  { %v201_v22 = vld [vmem:[%s481_s4] sm:$0xf] }
  0x90   :  { %142 = vst.msk [vmem:[%s482_s5] sm:$0xf] %vm68_vm0, %v141_v21  ;;  %v205_v25 = vadd.f32 %v204_v17, %v201_v22 }
  0x91   :  { %v97_v23 = vpop.f32.mrf.mxu0  ;;  %v124_v24 = vpop.f32.mrf.mxu1 }
  0x92   :  { %v100_v26 = vadd.f32 %v97_v23, %v75_v19  ;;  %v127_v27 = vadd.f32 %v124_v24, %v103_v20  ;;  %206 = vst.msk [vmem:[%s481_s4] sm:$0xf] %vm68_vm0, %v205_v25  ;;  %s229_s4 = sshll.u32 %s380_s26, 4  ;;  %s230_s4 = int_to_ptr.vmem [resolvable:$true] %s229_s4 }
  0x94   :  { %102 = vst.msk [vmem:[#allocation7] sm:$0xf] %vm65_vm3, %v100_v26 }
  0x95   :  { %128 = vst.msk [vmem:[#allocation8] sm:$0xf] %vm65_vm3, %v127_v27 }
  0x97   :  { %v207_v29 = vld [vmem:[%s482_s5] sm:$0xf] }
  0x98   :  { %v170_v30 = vpop.f32.mrf.mxu2  ;;  %v211_v31 = vadd.f32 %v210_v28, %v207_v29 }
  0x99   :  { %v196_v32 = vpop.f32.mrf.mxu3 }
  0x9a   :  { %212 = vst.msk [vmem:[%s482_s5] sm:$0xf] %vm68_vm0, %v211_v31 }
  0x9b   :  { %v149_v33 = vld [vmem:[#allocation7] sm:$0xf] }
  0x9c   :  { %v173_v34 = vadd.f32 %v170_v30, %v149_v33  ;;  %v175_v35 = vld [vmem:[#allocation8] sm:$0xf] }
  0x9d   :  { %v199_v36 = vadd.f32 %v196_v32, %v175_v35 }
  0x9e   :  { %174 = vst.msk [vmem:[#allocation7] sm:$0xf] %vm65_vm3, %v173_v34 }
  0x9f   :  { %200 = vst.msk [vmem:[#allocation8] sm:$0xf] %vm65_vm3, %v199_v36  ;;  %223 = dma.vmem_to_hbm [thread:$0]  %s219_s22, 64, %s221_s25, [#allocation4]  }
  0xa0   :  { %234 = dma.vmem_to_hbm [thread:$0]  %s230_s4, 64, %s232_s29, [#allocation9]  }
  0xa1   :  { %370 = dma.done.wait [#allocation4], 64  }
  0xa2   :  { %371 = vsyncadd [#allocation4], 4294967232 }
  0xa3   :  { %372 = dma.done.wait [#allocation9], 64  }
  0xa4   :  { %373 = vsyncadd [#allocation9], 4294967232 }
  0xa5   :  { %251 = vsyncpa [#allocation3], 1 }
  0xa6   :  { %252 = vsyncpa [#allocation6], 1 }
  0xa7   :  { %253 = vsyncpa [#allocation4], 1 }
  0xa8   :  { %254 = vsyncpa [#allocation9], 1 }

</bundles_post_ra>
